<compile_context>
chip_gen: v6e
topology: v6e:2x2x1
jax: 0.10.0
libtpu: 0.0.40
codegen_flags: <defaults>
</compile_context>

<pallas_src>
import jax
import jax.numpy as jnp
from jax import lax
from jax.experimental import pallas as pl
from jax.experimental.pallas import tpu as pltpu


# ----------------------------- Pallas kernel --------------------------------

def _fused_conv_block_kernel(x_ref, m1_ref, b1_ref, m2_ref, b2_ref, o_ref):
    """(conv3x3 * BN-scale + shift -> ReLU) x 2 for B batch elements.

    x_ref : (B, H, BW)        bf16  lane-dense input rows (lane-padded to 128k)
    m1_ref: (3*BW, WC1)       bf16  stacked banded conv matrices, BN scale folded
    b1_ref: (1, WC1)          f32   folded BN shift per (w, c) output lane
    m2_ref: (3*WC1, WC2)      bf16
    b2_ref: (1, WC2)          f32
    o_ref : (B, H, WC2)       bf16  lane-dense output rows
    """
    B, H, BW = x_ref.shape
    WC1 = m1_ref.shape[1]
    WC2 = m2_ref.shape[1]
    f32, bf16 = jnp.float32, jnp.bfloat16

    def row_taps(v_f32, center_bf16):
        """Build [x[r-1] | x[r] | x[r+1]] with zero halo rows, bf16, 128-aligned.

        Single-row shifts are done on f32 values (packing=1 -> plain sublane
        relayout); the shifted copies are cast to bf16 once, the center piece
        is reused as-is.
        """
        z = jnp.zeros((B, 1, v_f32.shape[-1]), f32)
        up = jnp.concatenate([z, v_f32[:, :H - 1, :]], axis=1)   # row r-1
        dn = jnp.concatenate([v_f32[:, 1:, :], z], axis=1)       # row r+1
        return jnp.concatenate(
            [up.astype(bf16), center_bf16, dn.astype(bf16)], axis=-1)

    # ---- layer 1: one wide-K matmul (K = 3*BW) + shift + ReLU ----------------
    x_bf = x_ref[...]                                             # (B, H, BW) bf16
    a1 = row_taps(x_bf.astype(f32), x_bf).reshape(B * H, 3 * BW)
    acc1 = jnp.dot(a1, m1_ref[...], preferred_element_type=f32)   # (B*H, WC1) f32
    y1 = jnp.maximum(acc1 + b1_ref[...], 0.0).reshape(B, H, WC1)  # f32

    # ---- layer 2: intermediate never leaves the chip -------------------------
    a2 = row_taps(y1, y1.astype(bf16)).reshape(B * H, 3 * WC1)
    acc2 = jnp.dot(a2, m2_ref[...], preferred_element_type=f32)   # (B*H, WC2) f32
    y2 = jnp.maximum(acc2 + b2_ref[...], 0.0)

    o_ref[...] = y2.reshape(B, H, WC2).astype(o_ref.dtype)        # bf16, 128 lanes


def fused_conv_block(x2d, kparams, *, block_batch):
    """x2d: (N, H, BW) bf16, lane-dense & lane-padded. Returns (N, H, WC2) bf16."""
    N, H, BW = x2d.shape
    m1, b1 = kparams["m1"], kparams["b1"]
    m2, b2 = kparams["m2"], kparams["b2"]
    WC1, WC2 = m1.shape[1], m2.shape[1]
    assert m1.shape[0] == 3 * BW and m2.shape[0] == 3 * WC1
    B = block_batch
    assert N % B == 0, "block_batch must divide the batch size"

    flops = 2 * N * H * (3 * BW * WC1 + 3 * WC1 * WC2)
    bytes_accessed = (N * H * BW * 2 + N * H * WC2 * 2
                      + int(m1.size) * 2 + int(m2.size) * 2 + (WC1 + WC2) * 4)

    return pl.pallas_call(
        _fused_conv_block_kernel,
        out_shape=jax.ShapeDtypeStruct((N, H, WC2), jnp.bfloat16),
        grid=(N // B,),
        in_specs=[
            pl.BlockSpec((B, H, BW), lambda n: (n, 0, 0)),        # x: B elems / step
            pl.BlockSpec((3 * BW, WC1), lambda n: (0, 0)),        # m1 (VMEM-resident)
            pl.BlockSpec((1, WC1), lambda n: (0, 0)),             # shift1
            pl.BlockSpec((3 * WC1, WC2), lambda n: (0, 0)),       # m2 (VMEM-resident)
            pl.BlockSpec((1, WC2), lambda n: (0, 0)),             # shift2
        ],
        out_specs=pl.BlockSpec((B, H, WC2), lambda n: (n, 0, 0)),
        compiler_params=pltpu.CompilerParams(
            dimension_semantics=("parallel",),
            vmem_limit_bytes=32 * 1024 * 1024),
        cost_estimate=pl.CostEstimate(flops=flops, transcendentals=0,
                                      bytes_accessed=bytes_accessed),
    )(x2d, m1, b1, m2, b2)


def _pick_batch_block(N, H, max_rows=256):
    """Largest divisor B of N with B*H <= max_rows, keeping >=2 grid steps
    when N > 1 (so the 'parallel' axis can still use both v7x TensorCores)."""
    best = 1
    for b in range(1, N + 1):
        if N % b or b * H > max_rows:
            continue
        if N > 1 and N // b < 2:
            continue
        best = b
    return best


# ------------------------- Parameter setup / folding -------------------------

def init_conv_block_params(key, in_channels, out_channels, eps=1e-5):
    """Deterministic synthetic parameters matching ConvBlock.__init__ shapes."""
    ks = jax.random.split(key, 8)

    def conv_params(kw_key, kb_key, cin, cout):
        fan_in = cin * 3 * 3
        bound = 1.0 / jnp.sqrt(fan_in)
        # PyTorch layout (Cout, Cin, 3, 3) -> kernel layout (3, 3, Cin, Cout)
        w = jax.random.uniform(kw_key, (cout, cin, 3, 3), jnp.float32,
                               -bound, bound)
        w = jnp.transpose(w, (2, 3, 1, 0))
        b = jax.random.uniform(kb_key, (cout,), jnp.float32, -bound, bound)
        return w, b

    def bn_params(kg_key, kb_key, c):
        gamma = 1.0 + 0.1 * jax.random.normal(kg_key, (c,), jnp.float32)
        beta = 0.1 * jax.random.normal(kb_key, (c,), jnp.float32)
        running_mean = jnp.zeros((c,), jnp.float32)
        running_var = jnp.ones((c,), jnp.float32)
        return gamma, beta, running_mean, running_var

    def fold(conv_b, gamma, beta, mean, var):
        scale = gamma / jnp.sqrt(var + eps)
        shift = beta + (conv_b - mean) * scale
        return scale, shift

    w1, b1 = conv_params(ks[0], ks[1], in_channels, out_channels)
    g1, be1, m1, v1 = bn_params(ks[2], ks[3], out_channels)
    s1, sh1 = fold(b1, g1, be1, m1, v1)

    w2, b2 = conv_params(ks[4], ks[5], out_channels, out_channels)
    g2, be2, m2, v2 = bn_params(ks[6], ks[7], out_channels)
    s2, sh2 = fold(b2, g2, be2, m2, v2)

    return dict(w1=w1, scale1=s1, bias1=sh1, w2=w2, scale2=s2, bias2=sh2)


def _round_up(x, m):
    return (x + m - 1) // m * m


def _banded_tap_matrix(w_hwio, W, band_rows):
    """(3,3,Cin,Cout) conv weights -> (3*band_rows, W*Cout) stacked banded matrix.

    Band kh: M[kh][wi*Cin+ci, wo*Cout+co] = w[kh, wi-wo+1, ci, co] if |wi-wo|<=1
    else 0, folding the kw taps, channel contraction and W zero-padding into a
    single lane-dense MXU contraction.  Rows >= W*Cin are zero (lane padding).
    """
    KH, KW, Cin, Cout = w_hwio.shape
    WCin, WCout = W * Cin, W * Cout
    assert band_rows >= WCin
    bands = []
    for kh in range(KH):
        m = jnp.zeros((W, Cin, W, Cout), jnp.float32)
        for kw in range(KW):
            sel = jnp.eye(W, W, k=1 - kw, dtype=jnp.float32)   # wi = wo + kw - 1
            m = m + jnp.einsum("ab,io->aibo", sel, w_hwio[kh, kw])
        m = m.reshape(WCin, WCout)
        bands.append(jnp.pad(m, ((0, band_rows - WCin), (0, 0))))
    return jnp.concatenate(bands, axis=0)


def prepare_kernel_params(params, W):
    """Folded conv/BN params -> lane-dense kernel form (scale folded into weights)."""
    Cin = params["w1"].shape[2]
    C1 = params["scale1"].shape[0]
    C2 = params["scale2"].shape[0]
    WC1, WC2 = W * C1, W * C2
    assert WC1 % 128 == 0 and WC2 % 128 == 0, (
        "lane-dense activation widths must be multiples of 128 for aligned "
        "tap concatenation at this tiling")
    bw_in = _round_up(W * Cin, 128)   # lane-pad the input band to a 128 multiple

    m1 = _banded_tap_matrix(params["w1"], W, bw_in)
    m1 = m1 * jnp.tile(params["scale1"], W)[None, :]            # fold BN scale (f32)
    m2 = _banded_tap_matrix(params["w2"], W, WC1)
    m2 = m2 * jnp.tile(params["scale2"], W)[None, :]

    return dict(
        m1=m1.astype(jnp.bfloat16),
        b1=jnp.tile(params["bias1"], W).reshape(1, WC1).astype(jnp.float32),
        m2=m2.astype(jnp.bfloat16),
        b2=jnp.tile(params["bias2"], W).reshape(1, WC2).astype(jnp.float32),
        bw_in=bw_in,
    )


# ------------------------------ Forward pass ---------------------------------

def conv_block_forward(x_nchw, kparams):
    N, Cin, H, W = x_nchw.shape
    bw_in = kparams["bw_in"]
    WC2 = kparams["m2"].shape[1]
    C2 = WC2 // W
    # NCHW (PyTorch) -> NHWC -> lane-dense (N, H, W*Cin) bf16, lane-padded.
    x2d = jnp.transpose(x_nchw, (0, 2, 3, 1)).reshape(N, H, W * Cin)
    x2d = x2d.astype(jnp.bfloat16)
    if bw_in > W * Cin:
        x2d = jnp.pad(x2d, ((0, 0), (0, 0), (0, bw_in - W * Cin)))
    out2d = fused_conv_block(x2d, kparams,
                             block_batch=_pick_batch_block(N, H))
    return jnp.transpose(out2d.reshape(N, H, W, C2), (0, 3, 1, 2))


def conv_block_reference(x_nchw, params):
    """Pure-JAX reference (XLA conv) mirroring the kernel's bf16 rounding points."""
    q = lambda a: a.astype(jnp.bfloat16).astype(jnp.float32)
    x = q(jnp.transpose(x_nchw, (0, 2, 3, 1)))
    layers = [(params["w1"], params["scale1"], params["bias1"]),
              (params["w2"], params["scale2"], params["bias2"])]
    for li, (w, s, b) in enumerate(layers):
        w_eff = q(w * s[None, None, None, :])   # BN scale folded pre-bf16, as in kernel
        y = lax.conv_general_dilated(
            x, w_eff, window_strides=(1, 1), padding="SAME",
            dimension_numbers=("NHWC", "HWIO", "NHWC"),
            precision=lax.Precision.HIGHEST)
        x = jnp.maximum(y + b, 0.0)
        if li == 0:
            x = q(x)   # the kernel feeds bf16 activations into layer 2's matmul
    return jnp.transpose(x, (0, 3, 1, 2))


# ---------------------------------- Main -------------------------------------

if __name__ == "__main__":
    in_channels, out_channels = 4, 8
    N, H, W = 8, 16, 16          # N=8 -> 4 elems/grid-step, 2 parallel grid steps

    key = jax.random.PRNGKey(0)
    kx, kp = jax.random.split(key)
    x = jax.random.normal(kx, (N, in_channels, H, W), jnp.float32)
    params = init_conv_block_params(kp, in_channels, out_channels)
    kparams = prepare_kernel_params(params, W)

    out = jax.block_until_ready(conv_block_forward(x, kparams))
    ref = jax.block_until_ready(conv_block_reference(x, params))

    assert out.shape == (N, out_channels, H, W)
    out_f32 = out.astype(jnp.float32)
    max_err = float(jnp.max(jnp.abs(out_f32 - ref)))
    assert jnp.allclose(out_f32, ref, atol=2e-2, rtol=2e-2), (
        "mismatch vs reference: max abs err = %e" % max_err)

    print("KERNEL_OK")
</pallas_src>

<mosaic_0001>
module attributes {stable_mosaic.version = 11 : i64} {
  func.func @_fused_conv_block_kernel(%arg0: i32, %arg1: memref<4x16x128xbf16, #tpu.memory_space<vmem>>, %arg2: memref<384x128xbf16, #tpu.memory_space<vmem>>, %arg3: memref<1x128xf32, #tpu.memory_space<vmem>>, %arg4: memref<384x128xbf16, #tpu.memory_space<vmem>>, %arg5: memref<1x128xf32, #tpu.memory_space<vmem>>, %arg6: memref<4x16x128xbf16, #tpu.memory_space<vmem>>) attributes {dimension_semantics = [#tpu.dimension_semantics<parallel>], iteration_bounds = array<i64: 2>, scalar_prefetch = 0 : i64, scratch_operands = 0 : i64, tpu.core_type = #tpu.core_type<tc>, window_params = [{transform_indices = @transform_0, window_bounds = array<i64: 4, 16, 128>}, {pipeline_mode = #tpu.pipeline_mode<synchronous>, transform_indices = @transform_1, window_bounds = array<i64: 384, 128>}, {pipeline_mode = #tpu.pipeline_mode<synchronous>, transform_indices = @transform_2, window_bounds = array<i64: 1, 128>}, {pipeline_mode = #tpu.pipeline_mode<synchronous>, transform_indices = @transform_3, window_bounds = array<i64: 384, 128>}, {pipeline_mode = #tpu.pipeline_mode<synchronous>, transform_indices = @transform_4, window_bounds = array<i64: 1, 128>}, {transform_indices = @transform_5, window_bounds = array<i64: 4, 16, 128>}]} {
    %c0 = arith.constant 0 : index
    %c0_0 = arith.constant 0 : index
    %c0_1 = arith.constant 0 : index
    %0 = vector.load %arg1[%c0, %c0_0, %c0_1] : memref<4x16x128xbf16, #tpu.memory_space<vmem>>, vector<4x16x128xbf16>
    %1 = arith.extf %0 : vector<4x16x128xbf16> to vector<4x16x128xf32>
    %cst = arith.constant 0.000000e+00 : f32
    %2 = vector.broadcast %cst : f32 to vector<4x1x128xf32>
    %3 = vector.extract_strided_slice %1 {offsets = [0, 0, 0], sizes = [4, 15, 128], strides = [1, 1, 1]} : vector<4x16x128xf32> to vector<4x15x128xf32>
    %4 = tpu.concatenate %2, %3 in 1 : vector<4x1x128xf32>, vector<4x15x128xf32> -> vector<4x16x128xf32>
    %5 = vector.extract_strided_slice %1 {offsets = [0, 1, 0], sizes = [4, 15, 128], strides = [1, 1, 1]} : vector<4x16x128xf32> to vector<4x15x128xf32>
    %6 = tpu.concatenate %5, %2 in 1 : vector<4x15x128xf32>, vector<4x1x128xf32> -> vector<4x16x128xf32>
    %7 = arith.truncf %4 : vector<4x16x128xf32> to vector<4x16x128xbf16>
    %8 = arith.truncf %6 : vector<4x16x128xf32> to vector<4x16x128xbf16>
    %9 = tpu.concatenate %7, %0, %8 in 2 : vector<4x16x128xbf16>, vector<4x16x128xbf16>, vector<4x16x128xbf16> -> vector<4x16x384xbf16>
    %10 = vector.shape_cast %9 : vector<4x16x384xbf16> to vector<64x384xbf16>
    %c0_2 = arith.constant 0 : index
    %c0_3 = arith.constant 0 : index
    %11 = vector.load %arg2[%c0_2, %c0_3] : memref<384x128xbf16, #tpu.memory_space<vmem>>, vector<384x128xbf16>
    %cst_4 = arith.constant dense<0.000000e+00> : vector<64x128xf32>
    %12 = tpu.matmul %10, %11, %cst_4 {dimension_numbers = #tpu.dot_dimension_numbers<[1], [0], [0], [1], [0, 0, 1, 1], [], []>} : vector<64x384xbf16>, vector<384x128xbf16>, vector<64x128xf32> -> vector<64x128xf32>
    %c0_5 = arith.constant 0 : index
    %c0_6 = arith.constant 0 : index
    %13 = vector.load %arg3[%c0_5, %c0_6] : memref<1x128xf32, #tpu.memory_space<vmem>>, vector<1x128xf32>
    %14 = vector.broadcast %13 : vector<1x128xf32> to vector<64x128xf32>
    %15 = arith.addf %12, %14 : vector<64x128xf32>
    %cst_7 = arith.constant 0.000000e+00 : f32
    %16 = vector.broadcast %cst_7 : f32 to vector<64x128xf32>
    %17 = arith.maximumf %15, %16 : vector<64x128xf32>
    %18 = vector.shape_cast %17 : vector<64x128xf32> to vector<4x16x128xf32>
    %19 = arith.truncf %18 : vector<4x16x128xf32> to vector<4x16x128xbf16>
    %cst_8 = arith.constant 0.000000e+00 : f32
    %20 = vector.broadcast %cst_8 : f32 to vector<4x1x128xf32>
    %21 = vector.extract_strided_slice %18 {offsets = [0, 0, 0], sizes = [4, 15, 128], strides = [1, 1, 1]} : vector<4x16x128xf32> to vector<4x15x128xf32>
    %22 = tpu.concatenate %20, %21 in 1 : vector<4x1x128xf32>, vector<4x15x128xf32> -> vector<4x16x128xf32>
    %23 = vector.extract_strided_slice %18 {offsets = [0, 1, 0], sizes = [4, 15, 128], strides = [1, 1, 1]} : vector<4x16x128xf32> to vector<4x15x128xf32>
    %24 = tpu.concatenate %23, %20 in 1 : vector<4x15x128xf32>, vector<4x1x128xf32> -> vector<4x16x128xf32>
    %25 = arith.truncf %22 : vector<4x16x128xf32> to vector<4x16x128xbf16>
    %26 = arith.truncf %24 : vector<4x16x128xf32> to vector<4x16x128xbf16>
    %27 = tpu.concatenate %25, %19, %26 in 2 : vector<4x16x128xbf16>, vector<4x16x128xbf16>, vector<4x16x128xbf16> -> vector<4x16x384xbf16>
    %28 = vector.shape_cast %27 : vector<4x16x384xbf16> to vector<64x384xbf16>
    %c0_9 = arith.constant 0 : index
    %c0_10 = arith.constant 0 : index
    %29 = vector.load %arg4[%c0_9, %c0_10] : memref<384x128xbf16, #tpu.memory_space<vmem>>, vector<384x128xbf16>
    %cst_11 = arith.constant dense<0.000000e+00> : vector<64x128xf32>
    %30 = tpu.matmul %28, %29, %cst_11 {dimension_numbers = #tpu.dot_dimension_numbers<[1], [0], [0], [1], [0, 0, 1, 1], [], []>} : vector<64x384xbf16>, vector<384x128xbf16>, vector<64x128xf32> -> vector<64x128xf32>
    %c0_12 = arith.constant 0 : index
    %c0_13 = arith.constant 0 : index
    %31 = vector.load %arg5[%c0_12, %c0_13] : memref<1x128xf32, #tpu.memory_space<vmem>>, vector<1x128xf32>
    %32 = vector.broadcast %31 : vector<1x128xf32> to vector<64x128xf32>
    %33 = arith.addf %30, %32 : vector<64x128xf32>
    %cst_14 = arith.constant 0.000000e+00 : f32
    %34 = vector.broadcast %cst_14 : f32 to vector<64x128xf32>
    %35 = arith.maximumf %33, %34 : vector<64x128xf32>
    %36 = vector.shape_cast %35 : vector<64x128xf32> to vector<4x16x128xf32>
    %37 = arith.truncf %36 : vector<4x16x128xf32> to vector<4x16x128xbf16>
    %c0_15 = arith.constant 0 : index
    %c0_16 = arith.constant 0 : index
    %c0_17 = arith.constant 0 : index
    %38 = vector.load %arg6[%c0_15, %c0_16, %c0_17] : memref<4x16x128xbf16, #tpu.memory_space<vmem>>, vector<4x16x128xbf16>
    tpu.vector_store %arg6[%c0_15, %c0_16, %c0_17], %37 {strides = array<i32>} : memref<4x16x128xbf16, #tpu.memory_space<vmem>>, vector<4x16x128xbf16>,
    return
  }
  func.func @transform_0(%arg0: i32) -> (i32, i32, i32) {
    %c0_i32 = arith.constant 0 : i32
    %c0_i32_0 = arith.constant 0 : i32
    %c0_i32_1 = arith.constant 0 : i32
    return %arg0, %c0_i32, %c0_i32_0 : i32, i32, i32
  }
  func.func @transform_1(%arg0: i32) -> (i32, i32) {
    %c0_i32 = arith.constant 0 : i32
    %c0_i32_0 = arith.constant 0 : i32
    %c0_i32_1 = arith.constant 0 : i32
    return %c0_i32, %c0_i32_0 : i32, i32
  }
  func.func @transform_2(%arg0: i32) -> (i32, i32) {
    %c0_i32 = arith.constant 0 : i32
    %c0_i32_0 = arith.constant 0 : i32
    %c0_i32_1 = arith.constant 0 : i32
    return %c0_i32, %c0_i32_0 : i32, i32
  }
  func.func @transform_3(%arg0: i32) -> (i32, i32) {
    %c0_i32 = arith.constant 0 : i32
    %c0_i32_0 = arith.constant 0 : i32
    %c0_i32_1 = arith.constant 0 : i32
    return %c0_i32, %c0_i32_0 : i32, i32
  }
  func.func @transform_4(%arg0: i32) -> (i32, i32) {
    %c0_i32 = arith.constant 0 : i32
    %c0_i32_0 = arith.constant 0 : i32
    %c0_i32_1 = arith.constant 0 : i32
    return %c0_i32, %c0_i32_0 : i32, i32
  }
  func.func @transform_5(%arg0: i32) -> (i32, i32, i32) {
    %c0_i32 = arith.constant 0 : i32
    %c0_i32_0 = arith.constant 0 : i32
    %c0_i32_1 = arith.constant 0 : i32
    return %arg0, %c0_i32, %c0_i32_0 : i32, i32, i32
  }
}

</mosaic_0001>

<bundles_post_ra>
// kernel: tpu_custom_call.1
= control target key start
LH: loop header
LB: loop body
LE: loop exit
PB: predicated region body
PF: predicated region fallthrough
CT: control target
= control target key end

     0   :  { %10 = vsyncpa [#allocation3], 0  ;;  %s2206_s0 = inlined_call_operand.hbm [shape: bf16[8,16,128], index: 0, kind: input, shape index: {}]   ;;  %s2207_s1 = inlined_call_operand.hbm [shape: bf16[384,128], index: 1, kind: input, shape index: {}]   ;;  %s2208_s2 = inlined_call_operand.vmem [shape: f32[1,128], index: 2, kind: input, shape index: {}]   ;;  %s2209_s3 = inlined_call_operand.hbm [shape: bf16[384,128], index: 3, kind: input, shape index: {}]   ;;  %s2210_s4 = inlined_call_operand.vmem [shape: f32[1,128], index: 4, kind: input, shape index: {}]   ;;  %s2211_s5 = inlined_call_operand.hbm [shape: bf16[8,16,128], index: 5, kind: output, shape index: {}]  }
   0x1   :  { %12 = vsyncpa [#allocation3 + $0x1], 0 }
   0x2   :  { %13 = vsyncpa [#allocation6], 0 }
   0x3   :  { %14 = vsyncpa [#allocation4], 0 }
   0x4   :  { %16 = vsyncpa [#allocation4 + $0x1], 0  ;;  %s1913_s18 = smov 0   ;;  %s1915_s19 = smov 0  }
   0x5   :  { %s1917_s20 = smov 0   ;;  %s1919_s21 = smov 0  }
   0x6 LB: > { %s1934_s22 = sadd.s32 4294967295, %s1872_s21   ;;  %s1271_s23 = sadd.s32 4294967294, %s1872_s21   ;;  %s1872_s21 = sphi %s1919_s21, %s2238_s21   ;;  %s1868_s20 = sphi %s1917_s20, %s2237_s20   ;;  %s1864_s19 = sphi %s1915_s19, %s2236_s19   ;;  %s1860_s18 = sphi %s1913_s18, %s2235_s18  }
   0x7   : > { %p42_p0 = scmp.ne.s32.totalorder %s1864_s19, %s1860_s18  ;;  %p2212_p1 = scmp.eq.s32.totalorder %s1934_s22, 0 }
   0x8   : > { %p150_p2 = scmp.eq.s32.totalorder %s1934_s22, 1  ;;  %p156_p3 = scmp.eq.s32.totalorder %s1271_s23, 1 }
   0x9   : > { %p1943_p4 = por %p2212_p1, %p42_p0  ;;  %p1272_p5 = scmp.ge.s32.totalorder %s1872_s21, 1 }
   0xa   : > { %p1948_p6 = por %p156_p3, %p42_p0  ;;  %p163_p7 = scmp.lt.s32.totalorder %s1872_s21, 3 }
   0xb   : > { %s2217_s24 = scalar_select %p1943_p4, 1, 0 }
   0xc   : > { %s2218_s25 = scalar_select %p1948_p6, 1, 0 }
   0xd   : > { %p1953_p8 = pnand %p1272_p5, %p163_p7  ;;  %s1874_s27 = smov [#allocation5]  }
   0xe   : > { %s175_s28 = sshll.u32 %s1874_s27, 4  ;;  %s1875_s30 = smov [#allocation7]   ;;  %s176_s28 = int_to_ptr.vmem [resolvable:$true] %s175_s28 }
   0xf   : > { %s2219_s26 = scalar_select %p1953_p8, 1, 0 }
  0x10   : > { %p1608_p9 = pneg %p1953_p8  ;;  %s191_s6 = sshll.u32 %s1875_s30, 4  ;;  %s192_s6 = int_to_ptr.vmem [resolvable:$true] %s191_s6 }
  0x11   : > { %s1735_s7 = scalar_lea.vmem %s176_s28, 3072  ;;  %p1743_p5 = scmp.lt.s32.totalorder %s176_s28, %s176_s28 }
  0x12   : > { %p1962_p11 = pnand %p1608_p9, %p2212_p1  ;;  %p1736_p13 = scmp.ne.s32.totalorder %s176_s28, %s1735_s7 }
  0x13   : > { %p1744_p7 = scmp.lt.s32.totalorder %s1735_s7, %s1735_s7 }
  0x14   : > { %p1726_p12 = pneg %p1962_p11 }
  0x15   : > { %p1745_p10 = por %p1744_p7, %p1743_p5 }
  0x16   : > { %p1738_p0 = pnand %p1736_p13, %p1726_p12 }
  0x18   : > { %p1739_p3 = pneg %p1738_p0 }
  0x1a   : > { %p1746_p9 = pnand %p1745_p10, %p1739_p3 }
  0x1c   : > { %1749 = shalt.err (!%p1746_p9)
}
  0x1d   : > { %s2213_s8 = smov 64   ;;  %s1877_s9 = smov 4  }
  0x1e   : > { %1611 = dma.hbm_to_vmem [thread:$0]  (!%p1962_p11), %s2207_s1, 3072, %s176_s28, [#allocation6], %s2213_s8, %s2213_s8, %s1877_s9  }
  0x1f   : > { %s1761_s12 = scalar_lea.vmem %s192_s6, 3072  ;;  %p1769_p10 = scmp.lt.s32.totalorder %s192_s6, %s192_s6 }
  0x20   : > { %p1762_p13 = scmp.ne.s32.totalorder %s192_s6, %s1761_s12  ;;  %p1770_p3 = scmp.lt.s32.totalorder %s1761_s12, %s1761_s12 }
  0x22   : > { %p1764_p0 = pnand %p1762_p13, %p1726_p12  ;;  %p1771_p7 = por %p1770_p3, %p1769_p10 }
  0x24   : > { %p1765_p5 = pneg %p1764_p0 }
  0x26   : > { %p1772_p9 = pnand %p1771_p7, %p1765_p5 }
  0x28   : > { %1775 = shalt.err (!%p1772_p9)
}
  0x29   : > { %1614 = dma.hbm_to_vmem [thread:$0]  (!%p1962_p11), %s2209_s3, 3072, %s192_s6, [#allocation6], %s2213_s8, %s2213_s8, %s1877_s9  }
  0x2a   : > { %s1991_s15 = sadd.s32 1, %s1872_s21   ;;  %s29_s16 = sadd.s32 1, %s1868_s20 }
  0x2b   : > { %s26_s17 = ssub.s32 %s1872_s21, %s1991_s15  ;;  %p36_p12 = scmp.ne.s32.totalorder %s1868_s20, %s1864_s19 }
  0x2c   : > { %p27_p13 = scmp.eq.s32.totalorder %s26_s17, 0  ;;  %p37_p0 = scmp.eq.s32.totalorder %s1872_s21, 0 }
  0x2d   : > { %p2001_p5 = por %p150_p2, %p36_p12  ;;  %p1625_p10 = scmp.lt.s32.totalorder %s1872_s21, 2 }
  0x2e   : > { %s2007_s27 = scalar_select %p27_p13, %s1868_s20, %s29_s16  }
  0x2f   : > { %s2221_s23 = scalar_select %p2001_p5, 1, 0 }
  0x30   : > { %p38_p3 = por %p37_p0, %p36_p12  ;;  %s208_s28 = sand.u32 1, %s1868_s20  }
  0x31   : > { %s1276_s29 = sshll.u32 %s208_s28, 5  ;;  %s1410_s30 = sshll.u32 %s1872_s21, 9 }
  0x32   : > { %s2014_s10 = scalar_lea.hbm %s2206_s0, %s1410_s30  ;;  %s212_s11 = scalar_lea.vmem [#allocation2], %s1276_s29 }
  0x33   : > { %s220_s12 = sshll.u32 %s212_s11, 4  ;;  %p2018_p2 = pnand %p1625_p10, %p38_p3  ;;  %s2016_s12 = int_to_ptr.vmem [resolvable:$true] %s220_s12 }
  0x34   : > { %s2022_s14 = scalar_lea.sflag [#allocation3], %s208_s28  ;;  %s1776_s16 = scalar_lea.hbm %s2014_s10, 512 }
  0x35   : > { %p1777_p11 = scmp.ne.s32.totalorder %s2014_s10, %s1776_s16  ;;  %p1778_p7 = pneg %p2018_p2 }
  0x36   : > { %s1781_s29 = scalar_lea.hbm %s2206_s0, 1024  ;;  %p1782_p13 = scmp.lt.s32.totalorder %s2014_s10, %s2206_s0 }
  0x37   : > { %p1779_p9 = pnand %p1778_p7, %p1777_p11  ;;  %p1783_p0 = scmp.lt.s32.totalorder %s1781_s29, %s1776_s16 }
  0x39   : > { %p1780_p12 = pneg %p1779_p9  ;;  %p1784_p10 = por %p1783_p0, %p1782_p13 }
  0x3b   : > { %p1785_p3 = pnand %p1784_p10, %p1780_p12 }
  0x3d   : > { %1788 = shalt.err (!%p1785_p3)
}
  0x3e   : > { %s1789_s28 = scalar_lea.vmem %s2016_s12, 512  ;;  %s1878_s11 = smov [#allocation2]  }
  0x3f   : > { %p1790_p1 = scmp.ne.s32.totalorder %s2016_s12, %s1789_s28  ;;  %s1794_s8 = sshll.u32 %s1878_s11, 4  ;;  %s1795_s8 = int_to_ptr.vmem [resolvable:$false] %s1794_s8 }
  0x40   : > { %s1796_s17 = scalar_lea.vmem %s1795_s8, 1024  ;;  %p1797_p9 = scmp.lt.s32.totalorder %s2016_s12, %s1795_s8 }
  0x41   : > { %p1792_p6 = pnand %p1790_p1, %p1778_p7  ;;  %p1798_p5 = scmp.lt.s32.totalorder %s1796_s17, %s1789_s28 }
  0x43   : > { %p1793_p11 = pneg %p1792_p6  ;;  %p1799_p4 = por %p1798_p5, %p1797_p9 }
  0x45   : > { %p1800_p8 = pnand %p1799_p4, %p1793_p11 }
  0x47   : > { %1803 = shalt.err (!%p1800_p8)
}
  0x48   : > { %s2223_s16 = smov 64   ;;  %p2224_p1 = scmp.ne.s32.totalorder %s2219_s26, 0 }
  0x49   : > { %1618 = dma.hbm_to_vmem [thread:$0]  (!%p2018_p2), %s2014_s10, 512, %s2016_s12, %s2022_s14, %s2223_s16, %s2223_s16, %s1877_s9  }
  0x4a   : > { %232 = sbr.rel (%p2224_p1) target bundleno = 576 (0x240), region = 40  ;;  %s2049_s30 = sand.u32 (!%p2224_p1), 1, %s1864_s19  }
  0x4b   : > { %s1281_s8 = sshll.u32 (!%p2224_p1), %s2049_s30, 5  ;;  %s235_s29 = scalar_lea.sflag (!%p2224_p1), [#allocation3], %s2049_s30 }
  0x4c   : > { %s2055_s13 = scalar_lea.vmem (!%p2224_p1), [#allocation2], %s1281_s8  ;;  %p2225_p4 = scmp.ne.s32.totalorder (!%p2224_p1), %s2217_s24, 0 }
  0x4f   : > { %1847 = dma.done.wait (%p2225_p4), %s235_s29, 512  }
  0x50   : > { %1849 = vsyncadd (%p2225_p4), %s235_s29, 4294966784  ;;  %p2226_p6 = scmp.eq.s32.totalorder %s1934_s22, 0 }
  0x52   : > { %1851 = dma.done.wait (%p2226_p6), [#allocation6], 6144   ;;  %p2227_p8 = pmov %p2226_p6 }
  0x53   : > { %v1668_v0 = vld [vmem:[#allocation5 + $0x78] sm:$0xff]   ;;  %v1671_v3 = vld [vmem:[#allocation5 + $0x70] sm:$0xff]   ;;  %v1674_v6 = vld [vmem:[#allocation5 + $0x68] sm:$0xff]   ;;  %vm300_vm0 = vcmask 1040384   ;;  %vm325_vm1 = vcmask 1046528   ;;  %vm1879_vm3 = vmmov 1  }
  0x54   : > { %1853 = vsyncadd (%p2227_p8), [#allocation6], 4294961152  ;;  %v1669_v1 = vld [vmem:[#allocation5 + $0xb8] sm:$0xff]   ;;  %1444 = vmatprep.subr.bf16.mxu0 %v1668_v0  ;;  %v1672_v4 = vld [vmem:[#allocation5 + $0xb0] sm:$0xff]   ;;  %s2150_s12 = scalar_lea.vmem [#allocation8], %s1281_s8  ;;  %s1420_s6 = sshll.u32 %s1934_s22, 9 }
  0x55   : > { %v1670_v2 = vld [vmem:[#allocation5 + $0x38] sm:$0xff]   ;;  %1548 = vmatprep.subr.bf16.mxu1 %v1669_v1  ;;  %v1673_v5 = vld [vmem:[#allocation5 + $0x30] sm:$0xff]   ;;  %v1675_v7 = vld [vmem:[#allocation5 + $0xa8] sm:$0xff]   ;;  %s1179_s14 = sshll.u32 %s2150_s12, 4  ;;  %s2162_s11 = scalar_lea.hbm %s2211_s5, %s1420_s6  ;;  %s2156_s14 = int_to_ptr.vmem [resolvable:$true] %s1179_s14 }
  0x56   : > { %1445 = vmatpush3.bf16.msra.mxu0 %v1670_v2  ;;  %1549 = vmatpush3.bf16.msra.mxu1 %v1669_v1  ;;  %v1676_v8 = vld [vmem:[#allocation5 + $0x28] sm:$0xff]   ;;  %v1677_v9 = vld [vmem:[#allocation5 + $0x60] sm:$0xff]   ;;  %v1680_v12 = vld [vmem:[#allocation5 + $0x58] sm:$0xff]   ;;  %s1165_s17 = scalar_lea.sflag [#allocation4], %s2049_s30  ;;  %s1804_s16 = scalar_lea.vmem %s2156_s14, 512 }
  0x57   : > { %1446 = vmatprep.subr.bf16.mxu0 %v1671_v3  ;;  %1550 = vmatprep.subr.bf16.mxu1 %v1672_v4  ;;  %v1678_v10 = vld [vmem:[#allocation5 + $0xa0] sm:$0xff]   ;;  %v1681_v13 = vld [vmem:[#allocation5 + $0x98] sm:$0xff]   ;;  %v1683_v15 = vld [vmem:[#allocation5 + $0x50] sm:$0xff]   ;;  %p1805_p5 = scmp.ne.s32.totalorder %s2156_s14, %s1804_s16  ;;  %p2232_p2 = scmp.ne.s32.totalorder %s2221_s23, 0 }
  0x58   : > { %v1679_v11 = vld [vmem:[#allocation5 + $0x20] sm:$0xff]   ;;  %v1682_v14 = vld [vmem:[#allocation5 + $0x18] sm:$0xff]   ;;  %v1684_v16 = vld [vmem:[#allocation5 + $0x90] sm:$0xff]   ;;  %s1880_s22 = smov [#allocation8]  }
  0x59   : > { %v1685_v17 = vld [vmem:[#allocation5 + $0x10] sm:$0xff]   ;;  %v1686_v18 = vld [vmem:[#allocation5 + $0x48] sm:$0xff]   ;;  %v1689_v21 = vld [vmem:[#allocation5 + $0x40] sm:$0xff]   ;;  %p1806_p7 = pnand %p1805_p5, %p2232_p2  ;;  %s1808_s8 = sshll.u32 %s1880_s22, 4  ;;  %s1809_s8 = int_to_ptr.vmem [resolvable:$false] %s1808_s8 }
  0x5a   : > { %1447 = vmatpush3.bf16.msra.mxu0 %v1673_v5  ;;  %1551 = vmatpush3.bf16.msra.mxu1 %v1672_v4  ;;  %v1687_v19 = vld [vmem:[#allocation5 + $0x88] sm:$0xff]   ;;  %v276_v22 = vld [vmem:[%s2055_s13] sm:$0xff]   ;;  %v2068_v24 = vld [vmem:[%s2055_s13 + $0x10] sm:$0xff]   ;;  %s1810_s29 = scalar_lea.vmem %s1809_s8, 1024  ;;  %p1811_p13 = scmp.lt.s32.totalorder %s2156_s14, %s1809_s8 }
  0x5b   : > { %1448 = vmatprep.subr.bf16.mxu0 %v1674_v6  ;;  %1552 = vmatprep.subr.bf16.mxu1 %v1675_v7  ;;  %v1688_v20 = vld [vmem:[#allocation5 + $0x8] sm:$0xff]   ;;  %v1690_v25 = vld [vmem:[#allocation5 + $0x80] sm:$0xff]   ;;  %v284_v26 = vunpack.c.l.bf16 %v276_v22  ;;  %v285_v27 = vunpack.c.h.bf16 %v276_v22  ;;  %v288_v30 = vunpack.c.l.bf16 %v2068_v24  ;;  %v289_v31 = vunpack.c.h.bf16 %v2068_v24  ;;  %v282_v39 = vld [vmem:[%s2055_s13 + $0x18] sm:$0xff]   ;;  %p1807_p12 = pneg %p1806_p7  ;;  %p1812_p0 = scmp.lt.s32.totalorder %s1810_s29, %s1804_s16 }
  0x5c   : > { %v278_v23 = vld [vmem:[%s2055_s13 + $0x8] sm:$0xff]   ;;  %v1691_v32 = vld [vmem:[#allocation5] sm:$0xff]   ;;  %613 = vmatprep.mubr.bf16.mxu0 %v276_v22  ;;  %v1696_v40 = vld [vmem:[#allocation7 + $0x78] sm:$0xff]   ;;  %v290_v51 = vunpack.c.l.bf16 %v282_v39  ;;  %v291_v56 = vunpack.c.h.bf16 %v282_v39 }
  0x5d   : > { %v286_v28 = vunpack.c.l.bf16 %v278_v23  ;;  %v287_v29 = vunpack.c.h.bf16 %v278_v23  ;;  %v301_v33 = vrot.slane %v284_v26, 7  ;;  %v302_v34 = vrot.slane %v285_v27, 7  ;;  %vm1314_vm2 = vmneg %vm300_vm0  ;;  %v1697_v58 = vld [vmem:[#allocation7 + $0x38] sm:$0xff]   ;;  %v1698_v61 = vld [vmem:[#allocation7 + $0x70] sm:$0xff]   ;;  %p1813_p10 = por %p1812_p0, %p1811_p13 }
  0x5e   : > { %1449 = vmatpush3.bf16.msra.mxu0 %v1676_v8  ;;  %1553 = vmatpush3.bf16.msra.mxu1 %v1675_v7  ;;  %v326_v35 = vrot.slane %v284_v26, 1  ;;  %v327_v36 = vrot.slane %v285_v27, 1  ;;  %v332_v43 = vrot.slane %v288_v30, 1  ;;  %v333_v44 = vrot.slane %v289_v31, 1  ;;  %vm2077_vm4 = vmpackc.low %vm325_vm1, %vm1879_vm3  ;;  %v1702_v59 = vld [vmem:[#allocation7 + $0xb8] sm:$0xff]   ;;  %v1699_v0 = vld [vmem:[#allocation7 + $0x30] sm:$0xff]  }
  0x5f   : > { %1450 = vmatprep.subr.bf16.mxu0 %v1677_v9  ;;  %1554 = vmatprep.subr.bf16.mxu1 %v1678_v10  ;;  %v329_v37 = vrot.slane %v286_v28, 1  ;;  %v330_v38 = vrot.slane %v287_v29, 1  ;;  %v303_v41 = vsel %vm300_vm0, %v301_v33, %v302_v34  ;;  %vm2083_vm5 = vmpackc.low %vm1879_vm3, %vm1314_vm2  ;;  %v304_v53 = vrot.slane %v286_v28, 7  ;;  %v1700_v3 = vld [vmem:[#allocation7 + $0x68] sm:$0xff]   ;;  %v1703_v7 = vld [vmem:[#allocation7 + $0x60] sm:$0xff]   ;;  %p1814_p3 = pnand %p1813_p10, %p1807_p12 }
  0x60   : > { %v328_v42 = vsel %vm325_vm1, %v326_v35, %v327_v36  ;;  %v1316_v48 = vpack.c.bf16 %v303_v41, %v301_v33  ;;  %v334_v50 = vsel %vm325_vm1, %v332_v43, %v333_v44  ;;  %v305_v54 = vrot.slane %v287_v29, 7  ;;  %v1701_v6 = vld [vmem:[#allocation7 + $0x28] sm:$0xff]   ;;  %v1717_v26 = vld [vmem:[#allocation7 + $0x90] sm:$0xff]   ;;  %v1716_v27 = vld [vmem:[#allocation7] sm:$0xff]  }
  0x61   : > { %v1331_v46 = vpack.c.bf16 %v327_v36, %v328_v42  ;;  %v331_v47 = vsel %vm325_vm1, %v329_v37, %v330_v38  ;;  %v1337_v55 = vpack.c.bf16 %v333_v44, %v334_v50  ;;  %v335_v57 = vrot.slane %v290_v51, 1  ;;  %v1712_v22 = vld [vmem:[#allocation7 + $0x48] sm:$0xff]   ;;  %v1719_v29 = vld [vmem:[#allocation7 + $0x80] sm:$0xff]  }
  0x62   : > { %1451 = vmatpush3.bf16.msra.mxu0 %v1679_v11  ;;  %1555 = vmatpush3.bf16.msra.mxu1 %v1678_v10  ;;  %v1334_v49 = vpack.c.bf16 %v330_v38, %v331_v47  ;;  %v336_v60 = vrot.slane %v291_v56, 1  ;;  %v307_v62 = vrot.slane %v288_v30, 7  ;;  %v308_v63 = vrot.slane %v289_v31, 7  ;;  %v1718_v28 = vld [vmem:[#allocation7 + $0x88] sm:$0xff]   ;;  %v2111_v33 = vld [vmem:[%s2208_s2] ss:$0 sm:$0xff] }
  0x63   : > { %1452 = vmatprep.subr.bf16.mxu0 %v1680_v12  ;;  %1556 = vmatprep.subr.bf16.mxu1 %v1681_v13  ;;  %v306_v1 = vsel %vm300_vm0, %v304_v53, %v305_v54  ;;  %v310_v10 = vrot.slane %v290_v51, 7  ;;  %v311_v11 = vrot.slane %v291_v56, 7 }
  0x64   : > { %1564 = vmatprep.mubr.msk.bf16.mxu1 %vm2077_vm4, %v1331_v46  ;;  %v337_v2 = vsel %vm325_vm1, %v335_v57, %v336_v60  ;;  %v1320_v4 = vpack.c.bf16 %v306_v1, %v304_v53  ;;  %v309_v8 = vsel %vm300_vm0, %v307_v62, %v308_v63 }
  0x65   : > { %v1340_v5 = vpack.c.bf16 %v336_v60, %v337_v2  ;;  %v1324_v9 = vpack.c.bf16 %v309_v8, %v307_v62  ;;  %v312_v12 = vsel %vm300_vm0, %v310_v10, %v311_v11 }
  0x66   : > { %1453 = vmatpush3.bf16.msra.mxu0 %v1682_v14  ;;  %1557 = vmatpush3.bf16.msra.mxu1 %v1681_v13  ;;  %v1328_v13 = vpack.c.bf16 %v312_v12, %v310_v10  ;;  %v1705_v14 = vld [vmem:[#allocation7 + $0xb0] sm:$0xff]  }
  0x67   : > { %1454 = vmatprep.subr.bf16.mxu0 %v1683_v15  ;;  %1558 = vmatprep.subr.bf16.mxu1 %v1684_v16  ;;  %v1704_v15 = vld [vmem:[#allocation7 + $0x20] sm:$0xff]  }
  0x6a   : > { %1455 = vmatpush3.bf16.msra.mxu0 %v1685_v17  ;;  %1559 = vmatpush3.bf16.msra.mxu1 %v1684_v16  ;;  %v1706_v16 = vld [vmem:[#allocation7 + $0x58] sm:$0xff]   ;;  %v1708_v17 = vld [vmem:[#allocation7 + $0xa8] sm:$0xff]  }
  0x6b   : > { %1456 = vmatprep.subr.bf16.mxu0 %v1686_v18  ;;  %1560 = vmatprep.subr.bf16.mxu1 %v1687_v19  ;;  %v1707_v18 = vld [vmem:[#allocation7 + $0x18] sm:$0xff]  }
  0x6e   : > { %1457 = vmatpush3.bf16.msra.mxu0 %v1688_v20  ;;  %1561 = vmatpush3.bf16.msra.mxu1 %v1687_v19  ;;  %v1709_v19 = vld [vmem:[#allocation7 + $0x50] sm:$0xff]   ;;  %v1711_v20 = vld [vmem:[#allocation7 + $0xa0] sm:$0xff]  }
  0x6f   : > { %1458 = vmatprep.subr.bf16.mxu0 %v1689_v21  ;;  %1562 = vmatprep.subr.bf16.mxu1 %v1690_v25  ;;  %v1710_v21 = vld [vmem:[#allocation7 + $0x10] sm:$0xff]  }
  0x72   : > { %1459 = vmatpush3.bf16.msra.mxu0 %v1691_v32  ;;  %1563 = vmatpush3.bf16.msra.mxu1 %v1690_v25  ;;  %v1715_v25 = vld [vmem:[#allocation7 + $0x40] sm:$0xff]  }
  0x73   : > { %1496 = vmatprep.subr.bf16.mxu0 %v1696_v40  ;;  %1572 = vmatprep.subr.bf16.mxu1 %v1702_v59 }
  0x75   : > { %1317 = vmatmul.mubr.msk.bf16.vlgmr.msra.gmra.mxu0 %vm2083_vm5, %v1316_v48  ;;  %1565 = vmatmul.mubr.msk.bf16.vlgmr.msra.gmra.mxu1 %vm2077_vm4, %v1334_v49 }
  0x76   : > { %621 = vmatprep.mubr.bf16.mxu0 %v278_v23  ;;  %1568 = vmatprep.mubr.msk.bf16.mxu1 %vm2077_vm4, %v1337_v55  ;;  %v1714_v23 = vld [vmem:[#allocation7 + $0x98] sm:$0xff]  }
  0x77   : > { %1497 = vmatpush3.bf16.msra.mxu0 %v1697_v58  ;;  %1573 = vmatpush3.bf16.msra.mxu1 %v1702_v59 }
  0x78   : > { %1498 = vmatprep.subr.bf16.mxu0 %v1698_v61  ;;  %1574 = vmatprep.subr.bf16.mxu1 %v1705_v14 }
  0x7b   : > { %1499 = vmatpush3.bf16.msra.mxu0 %v1699_v0  ;;  %1575 = vmatpush3.bf16.msra.mxu1 %v1705_v14 }
  0x7c   : > { %1500 = vmatprep.subr.bf16.mxu0 %v1700_v3  ;;  %1576 = vmatprep.subr.bf16.mxu1 %v1708_v17 }
  0x7d   : > { %1321 = vmatmul.mubr.msk.bf16.gmra.mxu0 %vm2083_vm5, %v1320_v4  ;;  %1569 = vmatmul.mubr.msk.bf16.gmra.mxu1 %vm2077_vm4, %v1340_v5 }
  0x7e   : > { %629 = vmatprep.mubr.bf16.mxu0 %v2068_v24  ;;  %v1713_v24 = vld [vmem:[#allocation7 + $0x8] sm:$0xff]  }
  0x7f   : > { %1501 = vmatpush3.bf16.msra.mxu0 %v1701_v6  ;;  %1577 = vmatpush3.bf16.msra.mxu1 %v1708_v17 }
  0x80   : > { %1502 = vmatprep.subr.bf16.mxu0 %v1703_v7  ;;  %1578 = vmatprep.subr.bf16.mxu1 %v1711_v20 }
  0x83   : > { %1503 = vmatpush3.bf16.msra.mxu0 %v1704_v15  ;;  %1579 = vmatpush3.bf16.msra.mxu1 %v1711_v20 }
  0x84   : > { %1504 = vmatprep.subr.bf16.mxu0 %v1706_v16  ;;  %1580 = vmatprep.subr.bf16.mxu1 %v1714_v23 }
  0x85   : > { %1325 = vmatmul.mubr.msk.bf16.gmra.mxu0 %vm2083_vm5, %v1324_v9 }
  0x86   : > { %637 = vmatprep.mubr.bf16.mxu0 %v282_v39 }
  0x87   : > { %1505 = vmatpush3.bf16.msra.mxu0 %v1707_v18  ;;  %1581 = vmatpush3.bf16.msra.mxu1 %v1714_v23 }
  0x88   : > { %1506 = vmatprep.subr.bf16.mxu0 %v1709_v19  ;;  %1582 = vmatprep.subr.bf16.mxu1 %v1717_v26 }
  0x8b   : > { %1507 = vmatpush3.bf16.msra.mxu0 %v1710_v21  ;;  %1583 = vmatpush3.bf16.msra.mxu1 %v1717_v26 }
  0x8c   : > { %1508 = vmatprep.subr.bf16.mxu0 %v1712_v22  ;;  %1584 = vmatprep.subr.bf16.mxu1 %v1718_v28 }
  0x8d   : > { %1329 = vmatmul.mubr.msk.bf16.gmra.mxu0 %vm2083_vm5, %v1328_v13 }
  0x8f   : > { %1509 = vmatpush3.bf16.msra.mxu0 %v1713_v24  ;;  %1585 = vmatpush3.bf16.msra.mxu1 %v1718_v28 }
  0x90   : > { %1510 = vmatprep.subr.bf16.mxu0 %v1715_v25  ;;  %1586 = vmatprep.subr.bf16.mxu1 %v1719_v29 }
  0x93   : > { %1511 = vmatpush3.bf16.msra.mxu0 %v1716_v27  ;;  %1587 = vmatpush3.bf16.msra.mxu1 %v1719_v29 }
 0x135   : > { %v1460_v30 = vpop.f32.mrf.mxu0  ;;  %v1566_v31 = vpop.f32.mrf.mxu1 }
 0x137   : > { %v1461_v32 = vpop.f32.mrf.mxu0  ;;  %v680_v34 = vpop.f32.mrf.mxu1 }
 0x138   : > { %v1462_v35 = vadd.f32 %v1461_v32, %v1460_v30 }
 0x139   : > { %v1463_v36 = vpop.f32.mrf.mxu0  ;;  %v1567_v38 = vpop.f32.mrf.mxu1 }
 0x13a   : > { %v616_v37 = vadd.f32 %v1462_v35, %v2111_v33 }
 0x13b   : > { %v1464_v39 = vpop.f32.mrf.mxu0  ;;  %v683_v46 = vpop.f32.mrf.mxu1 }
 0x13c   : > { %v681_v40 = vadd.f32 %v680_v34, %v616_v37  ;;  %v1465_v41 = vadd.f32 %v1464_v39, %v1463_v36 }
 0x13d   : > { %v1466_v42 = vpop.f32.mrf.mxu0  ;;  %v1570_v57 = vpop.f32.mrf.mxu1 }
 0x13e   : > { %v619_v43 = vadd.f32 %v1465_v41, %v2111_v33  ;;  %v711_v44 = vmax.f32 %v681_v40, 0.0 }
 0x13f   : > { %v1467_v47 = vpop.f32.mrf.mxu0  ;;  %v696_v5 = vpop.f32.mrf.mxu1 }
 0x140   : > { %v684_v48 = vadd.f32 %v683_v46, %v619_v43  ;;  %v1468_v49 = vadd.f32 %v1467_v47, %v1466_v42  ;;  %v731_v54 = vrot.slane %v711_v44, 7  ;;  %v755_v55 = vrot.slane %v711_v44, 1 }
 0x141   : > { %v1469_v50 = vpop.f32.mrf.mxu0  ;;  %v1571_v14 = vpop.f32.mrf.mxu1 }
 0x142   : > { %v712_v51 = vmax.f32 %v684_v48, 0.0  ;;  %v624_v53 = vadd.f32 %v1468_v49, %v2111_v33 }
 0x143   : > { %v1470_v56 = vpop.f32.mrf.mxu0  ;;  %v699_v28 = vpop.f32.mrf.mxu1 }
 0x144   : > { %v732_v58 = vrot.slane %v712_v51, 7  ;;  %v756_v59 = vrot.slane %v712_v51, 1  ;;  %v689_v60 = vadd.f32 %v1566_v31, %v624_v53  ;;  %v1471_v61 = vadd.f32 %v1470_v56, %v1469_v50 }
 0x145   : > { %v1472_v62 = vpop.f32.mrf.mxu0  ;;  %v719_v63 = vpack.c.bf16 %v712_v51, %v711_v44 }
 0x146   : > { %v733_v0 = vsel %vm300_vm0, %v731_v54, %v732_v58  ;;  %v627_v1 = vadd.f32 %v1471_v61, %v2111_v33  ;;  %v757_v2 = vsel %vm325_vm1, %v755_v55, %v756_v59  ;;  %v713_v4 = vmax.f32 %v689_v60, 0.0 }
 0x147   : > { %v1369_v3 = vpack.c.bf16 %v733_v0, %v731_v54  ;;  %1018 = vmatprep.mubr.bf16.mxu0 %v719_v63  ;;  %v1473_v6 = vpop.f32.mrf.mxu0  ;;  %v1384_v7 = vpack.c.bf16 %v756_v59, %v757_v2 }
 0x148   : > { %v692_v8 = vadd.f32 %v1567_v38, %v627_v1  ;;  %v1474_v9 = vadd.f32 %v1473_v6, %v1472_v62  ;;  %v758_v13 = vrot.slane %v713_v4, 1  ;;  %v734_v16 = vrot.slane %v713_v4, 7  ;;  %v1342_v6 = vld [vmem:[%s2210_s4] ss:$0 sm:$0xff] }
 0x149   : > { %v1475_v10 = vpop.f32.mrf.mxu0  ;;  %1370 = vmatmul.mubr.msk.bf16.vlgmr.msra.gmra.mxu0 %vm2083_vm5, %v1369_v3  ;;  %1588 = vmatprep.mubr.msk.bf16.mxu1 %vm2077_vm4, %v1384_v7 }
 0x14a   : > { %v714_v11 = vmax.f32 %v692_v8, 0.0  ;;  %v632_v12 = vadd.f32 %v1474_v9, %v2111_v33 }
 0x14b   : > { %v1476_v15 = vpop.f32.mrf.mxu0 }
 0x14c   : > { %v735_v17 = vrot.slane %v714_v11, 7  ;;  %v759_v18 = vrot.slane %v714_v11, 1  ;;  %v697_v19 = vadd.f32 %v696_v5, %v632_v12  ;;  %v1477_v20 = vadd.f32 %v1476_v15, %v1475_v10 }
 0x14d   : > { %v1478_v21 = vpop.f32.mrf.mxu0  ;;  %v720_v22 = vpack.c.bf16 %v714_v11, %v713_v4 }
 0x14e   : > { %v760_v23 = vsel %vm325_vm1, %v758_v13, %v759_v18  ;;  %v635_v24 = vadd.f32 %v1477_v20, %v2111_v33  ;;  %v736_v25 = vsel %vm300_vm0, %v734_v16, %v735_v17  ;;  %v715_v27 = vmax.f32 %v697_v19, 0.0 }
 0x14f   : > { %v1387_v26 = vpack.c.bf16 %v759_v18, %v760_v23  ;;  %1026 = vmatprep.mubr.bf16.mxu0 %v720_v22  ;;  %v1479_v29 = vpop.f32.mrf.mxu0  ;;  %v1373_v30 = vpack.c.bf16 %v736_v25, %v734_v16 }
 0x150   : > { %v700_v31 = vadd.f32 %v699_v28, %v635_v24  ;;  %v1480_v32 = vadd.f32 %v1479_v29, %v1478_v21  ;;  %v737_v38 = vrot.slane %v715_v27, 7  ;;  %v761_v43 = vrot.slane %v715_v27, 1 }
 0x151   : > { %v1481_v34 = vpop.f32.mrf.mxu0  ;;  %1374 = vmatmul.mubr.msk.bf16.gmra.mxu0 %vm2083_vm5, %v1373_v30  ;;  %1589 = vmatmul.mubr.msk.bf16.vlgmr.msra.gmra.mxu1 %vm2077_vm4, %v1387_v26 }
 0x152   : > { %v716_v35 = vmax.f32 %v700_v31, 0.0  ;;  %v640_v36 = vadd.f32 %v1480_v32, %v2111_v33 }
 0x153   : > { %v1482_v37 = vpop.f32.mrf.mxu0 }
 0x154   : > { %v738_v39 = vrot.slane %v716_v35, 7  ;;  %v705_v40 = vadd.f32 %v1570_v57, %v640_v36  ;;  %v1483_v41 = vadd.f32 %v1482_v37, %v1481_v34  ;;  %v721_v42 = vpack.c.bf16 %v716_v35, %v715_v27 }
 0x155   : > { %v762_v44 = vrot.slane %v716_v35, 1 }
 0x156   : > { %v643_v46 = vadd.f32 %v1483_v41, %v2111_v33  ;;  %1034 = vmatprep.mubr.bf16.mxu0 %v721_v42  ;;  %v739_v47 = vsel %vm300_vm0, %v737_v38, %v738_v39  ;;  %v717_v48 = vmax.f32 %v705_v40, 0.0 }
 0x157   : > { %v1377_v49 = vpack.c.bf16 %v739_v47, %v737_v38  ;;  %v763_v50 = vsel %vm325_vm1, %v761_v43, %v762_v44 }
 0x158   : > { %v708_v51 = vadd.f32 %v1571_v14, %v643_v46  ;;  %v1390_v53 = vpack.c.bf16 %v762_v44, %v763_v50  ;;  %v764_v55 = vrot.slane %v717_v48, 1  ;;  %v740_v33 = vrot.slane %v717_v48, 7 }
 0x159   : > { %1378 = vmatmul.mubr.msk.bf16.gmra.mxu0 %vm2083_vm5, %v1377_v49 }
 0x15a   : > { %v718_v54 = vmax.f32 %v708_v51, 0.0  ;;  %1592 = vmatprep.mubr.msk.bf16.mxu1 %vm2077_vm4, %v1390_v53 }
 0x15c   : > { %v741_v56 = vrot.slane %v718_v54, 7  ;;  %v722_v57 = vpack.c.bf16 %v718_v54, %v717_v48  ;;  %v765_v58 = vrot.slane %v718_v54, 1 }
 0x15e   : > { %1042 = vmatprep.mubr.bf16.mxu0 %v722_v57  ;;  %v742_v59 = vsel %vm300_vm0, %v740_v33, %v741_v56  ;;  %v766_v60 = vsel %vm325_vm1, %v764_v55, %v765_v58 }
 0x15f   : > { %v1381_v61 = vpack.c.bf16 %v742_v59, %v740_v33  ;;  %v1393_v62 = vpack.c.bf16 %v765_v58, %v766_v60 }
 0x161   : > { %1382 = vmatmul.mubr.msk.bf16.gmra.mxu0 %vm2083_vm5, %v1381_v61  ;;  %1593 = vmatmul.mubr.msk.bf16.gmra.mxu1 %vm2077_vm4, %v1393_v62 }
 0x209   : > { %v1512_v63 = vpop.f32.mrf.mxu0 }
 0x20b   : > { %v1513_v0 = vpop.f32.mrf.mxu0 }
 0x20c   : > { %v1514_v3 = vadd.f32 %v1513_v0, %v1512_v63 }
 0x20d   : > { %v1515_v1 = vpop.f32.mrf.mxu0 }
 0x20e   : > { %v1021_v52 = vadd.f32 %v1514_v3, %v1342_v6 }
 0x20f   : > { %v1516_v2 = vpop.f32.mrf.mxu0 }
 0x210   : > { %v1517_v7 = vadd.f32 %v1516_v2, %v1515_v1 }
 0x211   : > { %v1518_v4 = vpop.f32.mrf.mxu0  ;;  %v1590_v5 = vpop.f32.mrf.mxu1 }
 0x212   : > { %v1024_v14 = vadd.f32 %v1517_v7, %v1342_v6 }
 0x213   : > { %v1519_v8 = vpop.f32.mrf.mxu0  ;;  %v1085_v9 = vpop.f32.mrf.mxu1 }
 0x214   : > { %v1520_v10 = vadd.f32 %v1519_v8, %v1518_v4  ;;  %v1086_v13 = vadd.f32 %v1085_v9, %v1021_v52 }
 0x215   : > { %v1521_v11 = vpop.f32.mrf.mxu0  ;;  %v1591_v12 = vpop.f32.mrf.mxu1 }
 0x216   : > { %v1029_v45 = vadd.f32 %v1520_v10, %v1342_v6  ;;  %v1116_v21 = vmax.f32 %v1086_v13, 0.0 }
 0x217   : > { %v1522_v15 = vpop.f32.mrf.mxu0  ;;  %v1088_v16 = vpop.f32.mrf.mxu1 }
 0x218   : > { %v1523_v17 = vadd.f32 %v1522_v15, %v1521_v11  ;;  %v1089_v18 = vadd.f32 %v1088_v16, %v1024_v14  ;;  %v1094_v20 = vadd.f32 %v1590_v5, %v1029_v45 }
 0x219   : > { %v1524_v19 = vpop.f32.mrf.mxu0 }
 0x21a   : > { %v1032_v22 = vadd.f32 %v1523_v17, %v1342_v6  ;;  %v1117_v23 = vmax.f32 %v1089_v18, 0.0  ;;  %v1118_v28 = vmax.f32 %v1094_v20, 0.0 }
 0x21b   : > { %v1525_v24 = vpop.f32.mrf.mxu0 }
 0x21c   : > { %v1097_v25 = vadd.f32 %v1591_v12, %v1032_v22  ;;  %v1424_v26 = vpack.c.bf16 %v1117_v23, %v1116_v21  ;;  %v1526_v32 = vadd.f32 %v1525_v24, %v1524_v19 }
 0x21d   : > { %v1527_v27 = vpop.f32.mrf.mxu0 }
 0x21e   : > { %v1119_v29 = vmax.f32 %v1097_v25, 0.0  ;;  %1425 = vst [vmem:[%s2150_s12] sm:$0xff] %v1424_v26   ;;  %v1037_v40 = vadd.f32 %v1526_v32, %v1342_v6 }
 0x21f   : > { %v1528_v30 = vpop.f32.mrf.mxu0 }
 0x220   : > { %v1429_v31 = vpack.c.bf16 %v1119_v29, %v1118_v28  ;;  %v1529_v36 = vadd.f32 %v1528_v30, %v1527_v27 }
 0x221   : > { %v1530_v34 = vpop.f32.mrf.mxu0  ;;  %v1594_v35 = vpop.f32.mrf.mxu1 }
 0x222   : > { %1441 = vst [vmem:[%s2150_s12 + $0x8] sm:$0xff] %v1429_v31   ;;  %v1040_v46 = vadd.f32 %v1529_v36, %v1342_v6 }
 0x223   : > { %v1531_v37 = vpop.f32.mrf.mxu0  ;;  %v1101_v38 = vpop.f32.mrf.mxu1 }
 0x224   : > { %v1532_v39 = vadd.f32 %v1531_v37, %v1530_v34  ;;  %v1102_v44 = vadd.f32 %v1101_v38, %v1037_v40 }
 0x225   : > { %v1533_v41 = vpop.f32.mrf.mxu0  ;;  %v1595_v42 = vpop.f32.mrf.mxu1 }
 0x226   : > { %v1045_v43 = vadd.f32 %v1532_v39, %v1342_v6  ;;  %v1120_v53 = vmax.f32 %v1102_v44, 0.0 }
 0x227   : > { %v1534_v47 = vpop.f32.mrf.mxu0  ;;  %v1104_v48 = vpop.f32.mrf.mxu1 }
 0x228   : > { %v1535_v49 = vadd.f32 %v1534_v47, %v1533_v41  ;;  %v1105_v50 = vadd.f32 %v1104_v48, %v1040_v46  ;;  %v1110_v51 = vadd.f32 %v1594_v35, %v1045_v43 }
 0x22a   : > { %v1048_v54 = vadd.f32 %v1535_v49, %v1342_v6  ;;  %v1121_v55 = vmax.f32 %v1105_v50, 0.0  ;;  %v1122_v33 = vmax.f32 %v1110_v51, 0.0 }
 0x22c   : > { %v1113_v56 = vadd.f32 %v1595_v42, %v1048_v54  ;;  %v1434_v57 = vpack.c.bf16 %v1121_v55, %v1120_v53 }
 0x22e   : > { %v1123_v58 = vmax.f32 %v1113_v56, 0.0  ;;  %1442 = vst [vmem:[%s2150_s12 + $0x10] sm:$0xff] %v1434_v57  }
 0x230   : > { %v1439_v59 = vpack.c.bf16 %v1123_v58, %v1122_v33 }
 0x232   : > { %1443 = vst [vmem:[%s2150_s12 + $0x18] sm:$0xff] %v1439_v59  }
 0x233   : > { %1817 = shalt.err (!%p1814_p3)
}
 0x234   : > { %s1818_s13 = scalar_lea.hbm %s2162_s11, 512  ;;  %s1822_s9 = scalar_lea.hbm %s2211_s5, 1024 }
 0x235   : > { %p1819_p11 = scmp.ne.s32.totalorder %s2162_s11, %s1818_s13  ;;  %p1823_p4 = scmp.lt.s32.totalorder %s2162_s11, %s2211_s5 }
 0x236   : > { %p1824_p6 = scmp.lt.s32.totalorder %s1822_s9, %s1818_s13 }
 0x237   : > { %p1820_p9 = pnand %p1819_p11, %p2232_p2 }
 0x238   : > { %p1825_p8 = por %p1824_p6, %p1823_p4 }
 0x239   : > { %p1821_p1 = pneg %p1820_p9 }
 0x23b   : > { %p1826_p5 = pnand %p1825_p8, %p1821_p1 }
 0x23d   : > { %1829 = shalt.err (!%p1826_p5)
}
 0x23e   : > { %s1881_s6 = smov 64   ;;  %s1882_s7 = smov 4  }
 0x23f   : > { %1606 = dma.vmem_to_hbm [thread:$0]  (%p2232_p2), %s2156_s14, 512, %s2162_s11, %s1165_s17, %s1881_s6, %s1881_s6, %s1882_s7  }
 0x240 PF: > { %s1194_s28 = sand.u32 1, %s1860_s18   ;;  %p2233_p7 = scmp.ne.s32.totalorder %s2218_s25, 0 }
 0x241   : > { %p2234_p12 = scmp.ge.s32.totalorder %s1872_s21, 2  ;;  %s1195_s16 = scalar_lea.sflag [#allocation4], %s1194_s28 }
 0x243   : > { %p1620_p13 = pnand %p2234_p12, %p2233_p7 }
 0x245   : > { %p1621_p0 = pneg %p1620_p13 }
 0x247   : > { %1855 = dma.done.wait (%p1621_p0), %s1195_s16, 512  }
 0x248   : > { %1857 = vsyncadd (%p1621_p0), %s1195_s16, 4294966784  ;;  %p19_p10 = scmp.ge.s32.totalorder %s1991_s15, 4   ;;  %s2235_s18 = smov %s1864_s19 }
 0x249   : > { %s2236_s19 = smov %s1868_s20  ;;  %s2237_s20 = smov %s2007_s27 }
 0x24a   : > { %s2238_s21 = smov %s1991_s15  ;;  %21 = sbr.rel (!%p19_p10) target bundleno = 6 (0x6), region = 93 }
 0x24f   :  { %1200 = vsyncpa [#allocation3], 1 }
 0x250   :  { %1202 = vsyncpa [#allocation3 + $0x1], 1 }
 0x251   :  { %1203 = vsyncpa [#allocation6], 1 }
 0x252   :  { %1204 = vsyncpa [#allocation4], 1 }
 0x253   :  { %1206 = vsyncpa [#allocation4 + $0x1], 1 }

</bundles_post_ra>
